<compile_context>
chip_gen: v7x
topology: tpu7x:2x2x1
jax: 0.10.0
libtpu: 0.0.40
codegen_flags: <defaults>
</compile_context>

<pallas_src>
import jax
import jax.numpy as jnp
import numpy as np
from jax.experimental import pallas as pl
from jax.experimental.pallas import tpu as pltpu


# ----------------------------------------------------------------------------
# Kernels
# ----------------------------------------------------------------------------
def _time_aware_view_kernel(a_ref, c_ref, x_ref, r_ref, o_ref):
    """Fast path: x viewed as (B,H,T,p,N).

    a_ref, c_ref : (H,) f32 in SMEM
    x_ref, o_ref : (tT, p, N) block
    r_ref        : (tT, 1, N) block of column-expanded time distances (f32)
    The gate is computed at (tT, 1, N) resolution (1/p transcendentals per x
    element) and the row repeat_interleave is a free broadcast over the p
    sublane axis.
    """
    h = pl.program_id(2)                      # H is the innermost grid axis
    a = jnp.abs(a_ref[h])
    c = jnp.abs(c_ref[h])
    z = a * r_ref[...] - c                    # (tT, 1, N) f32
    gate = jax.nn.sigmoid(-z)                 # == 1/(1+exp(z)); EUP, exact
    o_ref[...] = (x_ref[...] * gate.astype(o_ref.dtype)).astype(o_ref.dtype)


def _time_aware_flat_kernel(a_ref, c_ref, x_ref, r_ref, o_ref):
    """Fallback for sublane-unfriendly p: x blocked as (tR, N) rows.

    r_ref is a (tR, N) block of the fully (row+column) expanded time
    distances; the gate is computed per element of the block.
    """
    h = pl.program_id(2)
    a = jnp.abs(a_ref[h])
    c = jnp.abs(c_ref[h])
    gate = jax.nn.sigmoid(-(a * r_ref[...] - c))     # (tR, N) f32
    o_ref[...] = (x_ref[...] * gate.astype(o_ref.dtype)).astype(o_ref.dtype)


# ----------------------------------------------------------------------------
# Tiling / VMEM helpers
# ----------------------------------------------------------------------------
def _tpu_vmem_bytes():
    """Physical VMEM per core; conservative fallback if the query fails."""
    try:
        info = pltpu.get_tpu_info()
        v = getattr(info, "vmem_capacity_bytes", None)
        if v:
            return int(v)
    except Exception:
        pass
    return 64 * 1024 * 1024          # v7x per-TensorCore figure (safe minimum)


def _pick_tile(total, unit_bytes, budget_bytes, valid):
    """Largest divisor t of `total` with valid(t) and t*unit_bytes <= budget."""
    fits = [t for t in range(1, total + 1)
            if total % t == 0 and valid(t) and t * unit_bytes <= budget_bytes]
    return max(fits) if fits else None


def _smallest_valid(total, valid):
    return min(t for t in range(1, total + 1) if total % t == 0 and valid(t))


# ----------------------------------------------------------------------------
# Wrapper
# ----------------------------------------------------------------------------
def time_aware_v1(x, R, a, c, *, donate_x=False):
    """x: (B, H, N, N); R: (B, T, T); a, c: (H,).  Returns (B, H, N, N)."""
    B, H, N, N2 = x.shape
    assert N == N2, "x must be (B, H, N, N)"
    Bb, T, T2 = R.shape
    assert Bb == B and T == T2, "R must be (B, T, T)"
    assert N % T == 0, "sequence length must be a multiple of #time steps"
    p = N // T

    itemsize = x.dtype.itemsize
    sublane = {4: 8, 2: 16, 1: 32}.get(itemsize, 8)   # sublane packing of x dtype

    # Generation-aware VMEM budgeting (128 MiB v5e/v6e, 64 MiB v7x).
    physical = _tpu_vmem_bytes()
    vmem_limit = min(int(physical * 0.80), 100 * 1024 * 1024)
    budget = int(vmem_limit * 0.85)

    a32 = a.astype(jnp.float32)
    c32 = c.astype(jnp.float32)
    aliases = {2: 0} if donate_x else {}

    use_view_path = (p % sublane == 0)

    if use_view_path:
        # -------- fast path: (B,H,T,p,N) view, gate broadcast over p --------
        # Double-buffered x + out tiles plus double-buffered (tT,1,N) R block.
        unit = 2 * (2 * p * N * itemsize) + 2 * N * 4     # bytes per tT=1
        tT = _pick_tile(T, unit, budget, lambda t: True)
        if tT is None:
            # Even a single time row overflows the budget: raise the limit.
            # TODO(synk): add an N (column) tiling grid axis for huge p*N.
            tT = 1
            vmem_limit = min(int(physical * 0.95), unit + 16 * 1024 * 1024)

        # Keep enough grid steps that v7x's two TensorCores both get work.
        while tT > 1 and B * H * (T // tT) < 4:
            tT = max(t for t in range(1, tT) if T % t == 0)

        grid = (B, T // tT, H)

        # Glue (tiny): expand R only along the column axis -> (B, T, 1, N).
        R_cols = jnp.repeat(R.astype(jnp.float32), p, axis=2)[:, :, None, :]
        x_v = x.reshape(B, H, T, p, N)       # free metadata reshape

        cost = pl.CostEstimate(
            flops=int(B * H * (N * N + 4 * T * N)),
            transcendentals=int(B * H * T * N),
            bytes_accessed=int(2 * x.size * itemsize + R_cols.size * 4
                               + a.size * 4 + c.size * 4),
        )

        out_v = pl.pallas_call(
            _time_aware_view_kernel,
            out_shape=jax.ShapeDtypeStruct((B, H, T, p, N), x.dtype),
            grid_spec=pltpu.PrefetchScalarGridSpec(
                num_scalar_prefetch=0,
                grid=grid,
                in_specs=[
                    pl.BlockSpec(memory_space=pltpu.MemorySpace.SMEM),   # a (H,)
                    pl.BlockSpec(memory_space=pltpu.MemorySpace.SMEM),   # c (H,)
                    pl.BlockSpec((None, None, tT, p, N),
                                 lambda b, r, h: (b, h, r, 0, 0)),       # x view
                    pl.BlockSpec((None, tT, 1, N),
                                 lambda b, r, h: (b, r, 0, 0)),          # R_cols
                ],
                out_specs=pl.BlockSpec((None, None, tT, p, N),
                                       lambda b, r, h: (b, h, r, 0, 0)),
            ),
            compiler_params=pltpu.CompilerParams(
                dimension_semantics=("parallel", "parallel", "parallel"),
                vmem_limit_bytes=int(vmem_limit)),
            cost_estimate=cost,
            input_output_aliases=aliases,
        )(a32, c32, x_v, R_cols)
        return out_v.reshape(B, H, N, N)

    # -------- fallback path: small / unaligned p, flat (rows, N) blocking ----
    # Expand R fully to (B, N, N) f32 in the wrapper (tiny vs. x traffic) so
    # the kernel blocks stay sublane/lane-dense with no in-kernel relayout.
    R_full = jnp.repeat(jnp.repeat(R.astype(jnp.float32), p, axis=1), p, axis=2)

    valid = lambda t: (t % sublane == 0) or (t == N)      # (8,128) block rule
    unit = 2 * (2 * N * itemsize) + 2 * N * 4             # bytes per row
    tR = _pick_tile(N, unit, budget, valid)
    if tR is None:
        tR = _smallest_valid(N, valid)
        vmem_limit = min(int(physical * 0.95), tR * unit + 16 * 1024 * 1024)
        # TODO(synk): add an N (column) tiling axis if even this overflows.

    grid = (B, N // tR, H)

    cost = pl.CostEstimate(
        flops=int(B * H * 4 * N * N),
        transcendentals=int(B * H * N * N),
        bytes_accessed=int(2 * x.size * itemsize + R_full.size * 4
                           + a.size * 4 + c.size * 4),
    )

    out = pl.pallas_call(
        _time_aware_flat_kernel,
        out_shape=jax.ShapeDtypeStruct((B, H, N, N), x.dtype),
        grid_spec=pltpu.PrefetchScalarGridSpec(
            num_scalar_prefetch=0,
            grid=grid,
            in_specs=[
                pl.BlockSpec(memory_space=pltpu.MemorySpace.SMEM),       # a (H,)
                pl.BlockSpec(memory_space=pltpu.MemorySpace.SMEM),       # c (H,)
                pl.BlockSpec((None, None, tR, N),
                             lambda b, r, h: (b, h, r, 0)),              # x
                pl.BlockSpec((None, tR, N),
                             lambda b, r, h: (b, r, 0)),                 # R_full
            ],
            out_specs=pl.BlockSpec((None, None, tR, N),
                                   lambda b, r, h: (b, h, r, 0)),
        ),
        compiler_params=pltpu.CompilerParams(
            dimension_semantics=("parallel", "parallel", "parallel"),
            vmem_limit_bytes=int(vmem_limit)),
        cost_estimate=cost,
        input_output_aliases=aliases,
    )(a32, c32, x, R_full)
    return out


# ----------------------------------------------------------------------------
# Pure-JAX reference (mirrors the PyTorch forward exactly)
# ----------------------------------------------------------------------------
def time_aware_v1_reference(x, R, a, c):
    B, H, N, _ = x.shape
    _, T, _ = R.shape
    p = N // T
    Rh = jnp.broadcast_to(R[:, None, :, :], (B, H, T, T))
    ah = jnp.abs(a)[None, :, None, None]
    ch = jnp.abs(c)[None, :, None, None]
    gate = 1.0 / (1.0 + jnp.exp(ah * Rh - ch))
    gate = jnp.repeat(jnp.repeat(gate, p, axis=2), p, axis=3)
    return x * gate


if __name__ == "__main__":
    key = jax.random.PRNGKey(0)
    k_a, k_c, k_x1, k_r1, k_x2, k_r2 = jax.random.split(key, 6)

    HEADS = 8
    # Parameters matching nn.Parameter(torch.rand(heads)) and 12 * torch.rand(heads).
    a = jax.random.uniform(k_a, (HEADS,), dtype=jnp.float32)
    c = 12.0 * jax.random.uniform(k_c, (HEADS,), dtype=jnp.float32)

    # Case 1: p = 8 (f32 sublane-aligned) -> fast broadcast-over-patches path.
    B1, T1, p1 = 2, 2, 8
    N1 = T1 * p1                                   # 16
    x1 = jax.random.normal(k_x1, (B1, HEADS, N1, N1), dtype=jnp.float32)
    R1 = jax.random.uniform(k_r1, (B1, T1, T1), dtype=jnp.float32) * 10.0
    out1 = jax.block_until_ready(time_aware_v1(x1, R1, a, c))
    ref1 = jax.block_until_ready(time_aware_v1_reference(x1, R1, a, c))
    np.testing.assert_allclose(np.asarray(out1), np.asarray(ref1),
                               rtol=1e-5, atol=1e-5)

    # Case 2: p = 4 (not sublane-aligned) -> flat row-blocked fallback path.
    B2, T2, p2 = 2, 4, 4
    N2 = T2 * p2                                   # 16
    x2 = jax.random.normal(k_x2, (B2, HEADS, N2, N2), dtype=jnp.float32)
    R2 = jax.random.uniform(k_r2, (B2, T2, T2), dtype=jnp.float32) * 10.0
    out2 = jax.block_until_ready(time_aware_v1(x2, R2, a, c))
    ref2 = jax.block_until_ready(time_aware_v1_reference(x2, R2, a, c))
    np.testing.assert_allclose(np.asarray(out2), np.asarray(ref2),
                               rtol=1e-5, atol=1e-5)

    print("KERNEL_OK")
</pallas_src>

<mosaic_0001>
module attributes {stable_mosaic.version = 11 : i64} {
  func.func @_time_aware_view_kernel(%arg0: i32, %arg1: i32, %arg2: i32, %arg3: memref<8xf32, #tpu.memory_space<smem>>, %arg4: memref<8xf32, #tpu.memory_space<smem>>, %arg5: memref<1x1x2x8x16xf32, #tpu.memory_space<vmem>>, %arg6: memref<1x2x1x16xf32, #tpu.memory_space<vmem>>, %arg7: memref<1x1x2x8x16xf32, #tpu.memory_space<vmem>>) attributes {dimension_semantics = [#tpu.dimension_semantics<parallel>, #tpu.dimension_semantics<parallel>, #tpu.dimension_semantics<parallel>], iteration_bounds = array<i64: 2, 1, 8>, scalar_prefetch = 0 : i64, scratch_operands = 0 : i64, tpu.core_type = #tpu.core_type<tc>, window_params = [{transform_indices = @transform_0, window_bounds = array<i64: 8>}, {transform_indices = @transform_1, window_bounds = array<i64: 8>}, {transform_indices = @transform_2, window_bounds = array<i64: 1, 1, 2, 8, 16>}, {transform_indices = @transform_3, window_bounds = array<i64: 1, 2, 1, 16>}, {transform_indices = @transform_4, window_bounds = array<i64: 1, 1, 2, 8, 16>}]} {
    %0 = arith.index_cast %arg2 : i32 to index
    %1 = memref.load %arg3[%0] : memref<8xf32, #tpu.memory_space<smem>>
    %2 = math.absf %1 : f32
    %3 = arith.index_cast %arg2 : i32 to index
    %4 = memref.load %arg4[%3] : memref<8xf32, #tpu.memory_space<smem>>
    %5 = math.absf %4 : f32
    %c0 = arith.constant 0 : index
    %c0_0 = arith.constant 0 : index
    %c0_1 = arith.constant 0 : index
    %c0_2 = arith.constant 0 : index
    %6 = vector.load %arg6[%c0, %c0_0, %c0_1, %c0_2] : memref<1x2x1x16xf32, #tpu.memory_space<vmem>>, vector<1x2x1x16xf32>
    %7 = vector.shape_cast %6 : vector<1x2x1x16xf32> to vector<2x1x16xf32>
    %8 = vector.broadcast %2 : f32 to vector<2x1x16xf32>
    %9 = arith.mulf %8, %7 : vector<2x1x16xf32>
    %10 = vector.broadcast %5 : f32 to vector<2x1x16xf32>
    %11 = arith.subf %9, %10 : vector<2x1x16xf32>
    %cst = arith.constant 0.000000e+00 : f32
    %12 = vector.broadcast %cst : f32 to vector<2x1x16xf32>
    %13 = arith.subf %12, %11 : vector<2x1x16xf32>
    %14 = arith.negf %13 : vector<2x1x16xf32>
    %15 = math.exp %14 : vector<2x1x16xf32>
    %cst_3 = arith.constant 1.000000e+00 : f32
    %16 = vector.broadcast %cst_3 : f32 to vector<2x1x16xf32>
    %17 = arith.addf %16, %15 : vector<2x1x16xf32>
    %18 = arith.divf %16, %17 : vector<2x1x16xf32>
    %c0_4 = arith.constant 0 : index
    %c0_5 = arith.constant 0 : index
    %c0_6 = arith.constant 0 : index
    %c0_7 = arith.constant 0 : index
    %c0_8 = arith.constant 0 : index
    %19 = vector.load %arg5[%c0_4, %c0_5, %c0_6, %c0_7, %c0_8] : memref<1x1x2x8x16xf32, #tpu.memory_space<vmem>>, vector<1x1x2x8x16xf32>
    %20 = vector.shape_cast %19 : vector<1x1x2x8x16xf32> to vector<2x8x16xf32>
    %21 = vector.broadcast %18 : vector<2x1x16xf32> to vector<2x8x16xf32>
    %22 = arith.mulf %20, %21 : vector<2x8x16xf32>
    %c0_9 = arith.constant 0 : index
    %c0_10 = arith.constant 0 : index
    %c0_11 = arith.constant 0 : index
    %c0_12 = arith.constant 0 : index
    %c0_13 = arith.constant 0 : index
    %23 = vector.load %arg7[%c0_9, %c0_10, %c0_11, %c0_12, %c0_13] : memref<1x1x2x8x16xf32, #tpu.memory_space<vmem>>, vector<1x1x2x8x16xf32>
    %24 = vector.shape_cast %23 : vector<1x1x2x8x16xf32> to vector<2x8x16xf32>
    %25 = vector.shape_cast %22 : vector<2x8x16xf32> to vector<1x1x2x8x16xf32>
    tpu.vector_store %arg7[%c0_9, %c0_10, %c0_11, %c0_12, %c0_13], %25 {strides = array<i32>} : memref<1x1x2x8x16xf32, #tpu.memory_space<vmem>>, vector<1x1x2x8x16xf32>,
    return
  }
  func.func @transform_0(%arg0: i32, %arg1: i32, %arg2: i32) -> i32 {
    %c0_i32 = arith.constant 0 : i32
    %c0_i32_0 = arith.constant 0 : i32
    return %c0_i32 : i32
  }
  func.func @transform_1(%arg0: i32, %arg1: i32, %arg2: i32) -> i32 {
    %c0_i32 = arith.constant 0 : i32
    %c0_i32_0 = arith.constant 0 : i32
    return %c0_i32 : i32
  }
  func.func @transform_2(%arg0: i32, %arg1: i32, %arg2: i32) -> (i32, i32, i32, i32, i32) {
    %c0_i32 = arith.constant 0 : i32
    %c0_i32_0 = arith.constant 0 : i32
    %c0_i32_1 = arith.constant 0 : i32
    return %arg0, %arg2, %arg1, %c0_i32, %c0_i32_0 : i32, i32, i32, i32, i32
  }
  func.func @transform_3(%arg0: i32, %arg1: i32, %arg2: i32) -> (i32, i32, i32, i32) {
    %c0_i32 = arith.constant 0 : i32
    %c0_i32_0 = arith.constant 0 : i32
    %c0_i32_1 = arith.constant 0 : i32
    return %arg0, %arg1, %c0_i32, %c0_i32_0 : i32, i32, i32, i32
  }
  func.func @transform_4(%arg0: i32, %arg1: i32, %arg2: i32) -> (i32, i32, i32, i32, i32) {
    %c0_i32 = arith.constant 0 : i32
    %c0_i32_0 = arith.constant 0 : i32
    %c0_i32_1 = arith.constant 0 : i32
    return %arg0, %arg2, %arg1, %c0_i32, %c0_i32_0 : i32, i32, i32, i32, i32
  }
}

</mosaic_0001>

<bundles_post_ra>
// kernel: tpu_custom_call.1
= control target key start
LH: loop header
LB: loop body
LE: loop exit
PB: predicated region body
PF: predicated region fallthrough
CT: control target
= control target key end

     0   :  { %s1095_s0 = inlined_call_operand.hbm [shape: f32[8], index: 0, kind: input, shape index: {}]   ;;  %s1096_s1 = inlined_call_operand.vmem [shape: f32[8], index: 1, kind: input, shape index: {}]   ;;  %s1097_s2 = inlined_call_operand.hbm [shape: f32[2,8,2,8,16], index: 2, kind: input, shape index: {}]   ;;  %s1098_s3 = inlined_call_operand.vmem [shape: f32[2,2,1,16], index: 3, kind: input, shape index: {}]   ;;  %s1099_s4 = inlined_call_operand.hbm [shape: f32[2,8,2,8,16], index: 4, kind: output, shape index: {}]  }
   0x1   :  { %1107 = sst [smem:[#allocation17_spill]] %s1095_s0 }
   0x2   :  { %1108 = sst [smem:[#allocation18_spill]] %s1096_s1 }
   0x3   :  { %9 = vsyncpa [#allocation5], 0 }
   0x4   :  { %10 = vsyncpa [#allocation6], 0 }
   0x5   :  { %11 = vsyncpa [#allocation3], 0 }
   0x6   :  { %13 = vsyncpa [#allocation3 + $0x1], 0 }
   0x7   :  { %14 = vsyncpa [#allocation4], 0 }
   0x8   :  { %16 = vsyncpa [#allocation4 + $0x1], 0  ;;  %s840_s15 = smov 0   ;;  %s842_s16 = smov 0  }
   0x9   :  { %s844_s17 = smov 0   ;;  %s846_s18 = smov 0  }
   0xa   :  { %s848_s19 = smov 0   ;;  %s850_s20 = smov 0  }
   0xb   :  { %s852_s21 = smov 0   ;;  %s854_s22 = smov 0  }
   0xc LB: > { %1109 = sst [smem:[#allocation14_spill]] %s797_s20  ;;  %s506_s23 = sadd.s32 4294967295, %s805_s22   ;;  %s805_s22 = sphi %s854_s22, %s22_s22   ;;  %s801_s21 = sphi %s852_s21, %s1133_s21   ;;  %s797_s20 = sphi %s850_s20, %s1128_s20   ;;  %s793_s19 = sphi %s848_s19, %s1132_s19   ;;  %s789_s18 = sphi %s846_s18, %s1127_s18   ;;  %s785_s17 = sphi %s844_s17, %s1131_s17   ;;  %s781_s16 = sphi %s842_s16, %s1130_s16   ;;  %s777_s15 = sphi %s840_s15, %s1129_s15  }
   0xd   : > { %s507_s24 = sadd.s32 4294967294, %s805_s22   ;;  %p101_p0 = scmp.ne.s32.totalorder %s785_s17, %s781_s16 }
   0xe   : > { %p102_p1 = scmp.eq.s32.totalorder %s805_s22, 0  ;;  %p107_p2 = scmp.ne.s32.totalorder %s781_s16, %s777_s15 }
   0xf   : > { %p888_p3 = scmp.eq.s32.totalorder %s506_s23, 0  ;;  %p163_p4 = scmp.eq.s32.totalorder %s506_s23, 15 }
  0x10   : > { %p103_p5 = por %p102_p1, %p101_p0  ;;  %p169_p6 = scmp.eq.s32.totalorder %s507_s24, 15 }
  0x11   : > { %s1110_s26 = scalar_select %p888_p3, 1, 0 }
  0x12   : > { %p894_p7 = por %p888_p3, %p107_p2  ;;  %p898_p8 = por %p163_p4, %p101_p0 }
  0x13   : > { %p902_p9 = por %p169_p6, %p107_p2  ;;  %p508_p10 = scmp.ge.s32.totalorder %s805_s22, 1 }
  0x14   : > { %s1111_s27 = scalar_select %p894_p7, 1, 0 }
  0x15   : > { %s1112_s28 = scalar_select %p898_p8, 1, 0 }
  0x16   : > { %s1113_s29 = scalar_select %p902_p9, 1, 0 }
  0x17   : > { %p176_p11 = scmp.lt.s32.totalorder %s805_s22, 17  ;;  %p559_p13 = scmp.lt.s32.totalorder %s805_s22, 16 }
  0x18   : > { %1114 = sst [smem:[#allocation15_spill]] %s1113_s29  ;;  %s1116_s1 = sld [smem:[#allocation18_spill]] }
  0x19   : > { %p908_p12 = pnand %p508_p10, %p176_p11  ;;  %p918_p1 = pnand %p559_p13, %p103_p5 }
  0x1a   : > { %s1119_s0 = sld [smem:[#allocation17_spill]] }
  0x1b   : > { %p542_p0 = pneg %p908_p12 }
  0x1d   : > { %p924_p2 = pnand %p542_p0, %p888_p3 }
  0x1e   : > { %s198_s7 = sshll.u32 %s1116_s1, 4  ;;  %s199_s7 = int_to_ptr.vmem [resolvable:$true] %s198_s7 }
  0x1f   : > { %p643_p5 = pneg %p924_p2 }
  0x20   : > { %s641_s12 = scalar_lea.hbm %s1119_s0, 16 }
  0x21   : > { %p642_p4 = scmp.ne.s32.totalorder %s1119_s0, %s641_s12  ;;  %p648_p11 = scmp.lt.u32.totalorder %s641_s12, %s1119_s0 }
  0x23   : > { %p644_p6 = pnand %p643_p5, %p642_p4 }
  0x25   : > { %p645_p10 = pneg %p644_p6 }
  0x27   : > { %p650_p13 = pnand %p648_p11, %p645_p10 }
  0x29   : > { %653 = shalt.err (!%p650_p13)
}
  0x2a   : > { %s807_s5 = smov [#allocation2]   ;;  %s654_s11 = scalar_lea.vmem %s199_s7, 16 }
  0x2b   : > { %545 = dma.hbm_to_smem (!%p924_p2), %s1119_s0, 16, %s807_s5, [#allocation5]  }
  0x2c   : > { %p655_p0 = scmp.ne.s32.totalorder %s199_s7, %s654_s11  ;;  %p662_p7 = scmp.lt.s32.totalorder %s199_s7, %s199_s7 }
  0x2d   : > { %p663_p4 = scmp.lt.s32.totalorder %s654_s11, %s654_s11 }
  0x2e   : > { %p657_p9 = pnand %p655_p0, %p643_p5 }
  0x2f   : > { %p664_p6 = por %p663_p4, %p662_p7 }
  0x30   : > { %p658_p8 = pneg %p657_p9 }
  0x32   : > { %p665_p3 = pnand %p664_p6, %p658_p8 }
  0x34   : > { %668 = shalt.err (!%p665_p3)
}
  0x35   : > { %s808_s13 = smov [#allocation7]   ;;  %s34_s12 = sadd.s32 1, %s797_s20 }
  0x36   : > { %548 = dma.vmem_to_smem (!%p924_p2), %s199_s7, 16, %s808_s13, [#allocation6]  }
  0x37   : > { %s41_s14 = sadd.s32 1, %s801_s21  ;;  %p35_p9 = scmp.ge.s32.totalorder %s34_s12, 8 }
  0x38   : > { %s209_s23 = sand.u32 1, %s785_s17   ;;  %s513_s5 = sshll.u32 %s797_s20, 1 }
  0x39   : > { %s512_s24 = sshll.u32 %s209_s23, 4  ;;  %s1135_s12 = smov (%p35_p9, %s34_s12), 0 }
  0x3a   : > { %1120 = sst [smem:[#allocation16_spill]] %s1135_s12  ;;  %s1137_s14 = smov (!%p35_p9, %s41_s14), %s801_s21 }
  0x3b   : > { %s88_s9 = ssub.s32 %s797_s20, %s1135_s12  ;;  %p43_p3 = scmp.ge.s32.totalorder %s1137_s14, 2 }
  0x3c   : > { %s514_s6 = sshll.u32 %s801_s21, 4  ;;  %s213_s10 = scalar_lea.vmem [#allocation8], %s512_s24 }
  0x3d   : > { %s224_s7 = sshll.u32 %s213_s10, 4  ;;  %s1139_s14 = smov (%p43_p3, %s1137_s14), 0  ;;  %s958_s7 = int_to_ptr.vmem [resolvable:$true] %s224_s7 }
  0x3e   : > { %s221_s11 = sadd.s32 %s514_s6, %s513_s5  ;;  %s87_s13 = ssub.s32 %s801_s21, %s1139_s14 }
  0x3f   : > { %s515_s25 = sshll.u32 %s221_s11, 7  ;;  %s89_s0 = sor.u32 %s88_s9, %s87_s13 }
  0x40   : > { %s965_s12 = scalar_lea.hbm %s1097_s2, %s515_s25  ;;  %p92_p7 = scmp.eq.s32.totalorder %s89_s0, 0 }
  0x41   : > { %s1121_s24 = sadd.s32 1, %s785_s17  ;;  %s972_s20 = scalar_lea.sflag [#allocation3], %s209_s23 }
  0x42   : > { %s970_s10 = scalar_select %p92_p7, %s785_s17, %s1121_s24  }
  0x43   : > { %s669_s5 = scalar_lea.hbm %s965_s12, 256  ;;  %p671_p2 = pneg %p918_p1 }
  0x44   : > { %p670_p8 = scmp.ne.s32.totalorder %s965_s12, %s669_s5  ;;  %s674_s29 = scalar_lea.hbm %s1097_s2, 4096 }
  0x45   : > { %p675_p11 = scmp.lt.u32.totalorder %s965_s12, %s1097_s2  ;;  %p676_p13 = scmp.lt.u32.totalorder %s674_s29, %s669_s5 }
  0x46   : > { %p672_p5 = pnand %p671_p2, %p670_p8  ;;  %p678_p4 = scmp.lt.u32.totalorder %s669_s5, %s965_s12 }
  0x47   : > { %p677_p0 = por %p676_p13, %p675_p11 }
  0x48   : > { %p673_p10 = pneg %p672_p5 }
  0x49   : > { %p679_p6 = por %p678_p4, %p677_p0 }
  0x4b   : > { %p680_p9 = pnand %p679_p6, %p673_p10 }
  0x4d   : > { %683 = shalt.err (!%p680_p9)
}
  0x4e   : > { %s684_s0 = scalar_lea.vmem %s958_s7, 256  ;;  %s809_s23 = smov [#allocation8]  }
  0x4f   : > { %p685_p3 = scmp.ne.s32.totalorder %s958_s7, %s684_s0  ;;  %s689_s11 = sshll.u32 %s809_s23, 4  ;;  %s690_s11 = int_to_ptr.vmem [resolvable:$false] %s689_s11 }
  0x50   : > { %s691_s13 = scalar_lea.vmem %s690_s11, 512  ;;  %p692_p5 = scmp.lt.s32.totalorder %s958_s7, %s690_s11 }
  0x51   : > { %p687_p7 = pnand %p685_p3, %p671_p2  ;;  %p693_p11 = scmp.lt.s32.totalorder %s691_s13, %s684_s0 }
  0x53   : > { %p688_p8 = pneg %p687_p7  ;;  %p694_p13 = por %p693_p11, %p692_p5 }
  0x55   : > { %p695_p0 = pnand %p694_p13, %p688_p8 }
  0x57   : > { %698 = shalt.err (!%p695_p0)
}
  0x58   : > { %s810_s24 = smov 128   ;;  %s811_s5 = smov 8  }
  0x59   : > { %552 = dma.hbm_to_vmem [thread:$0]  (!%p918_p1), %s965_s12, 256, %s958_s7, %s972_s20, %s810_s24, %s810_s24, %s811_s5  }
  0x5a   : > { %248 = sbr.rel (%p908_p12) target bundleno = 166 (0xa6), region = 36  ;;  %p1122_p2 = scmp.ne.s32.totalorder (!%p908_p12), %s1110_s26, 0 }
  0x61   : > { %760 = dma.done.wait (%p1122_p2), [#allocation5], 16  }
  0x62   : > { %762 = vsyncadd (%p1122_p2), [#allocation5], 4294967280 }
  0x63   : > { %764 = dma.done.wait (%p1122_p2), [#allocation6], 16  }
  0x64   : > { %766 = vsyncadd (%p1122_p2), [#allocation6], 4294967280  ;;  %s1011_s1 = sand.u32 1, %s781_s16   ;;  %p1123_p12 = scmp.ne.s32.totalorder %s1111_s27, 0 }
  0x65   : > { %s519_s20 = sshll.u32 %s1011_s1, 4  ;;  %s259_s30 = scalar_lea.sflag [#allocation3], %s1011_s1 }
  0x66   : > { %s1017_s8 = scalar_lea.vmem [#allocation8], %s519_s20 }
  0x67   : > { %768 = dma.done.wait (%p1123_p12), %s259_s30, 256  }
  0x68   : > { %770 = vsyncadd (%p1123_p12), %s259_s30, 4294967040 }
  0x69   : > { %267 = sfence }
  0x6a   : > { %p298_p1 = scmp.lt.s32.totalorder %s793_s19, 1  ;;  %s307_s26 = sld [smem:[#allocation2 + %s789_s18]]  ;;  %v337_v15 = vlaneseq  ;;  %v333_v20 = vld [vmem:[%s1017_s8] sm:$0xff]  ;;  %v334_v23 = vld [vmem:[%s1017_s8 + $0x8] sm:$0xff]  ;;  %vm349_vm0 = vcmask 130048  }
  0x6b   : > { %s309_s12 = sld [smem:[#allocation7 + %s789_s18]]  ;;  %s525_s27 = sshll.u32 %s789_s18, 1 }
  0x6c   : > { %s299_s7 = scalar_select %p298_p1, %s793_s19, 1  ;;  %v338_v17 = vshrl.u32 %v337_v15, 7 }
  0x6d   : > { %s526_s11 = sshll.u32 %s793_s19, 4  ;;  %s295_s24 = scalar_lea.vmem [#allocation9], %s519_s20 }
  0x6e   : > { %s521_s25 = sshll.u32 %s299_s7, 1  ;;  %v339_v18 = vsub.s32 0, %v338_v17  ;;  %s367_s13 = sadd.s32 %s526_s11, %s525_s27 }
  0x6f   : > { %s304_s6 = scalar_lea.vmem %s1098_s3, %s521_s25  ;;  %s370_s5 = sshll.u32 %s295_s24, 4  ;;  %s1036_s5 = int_to_ptr.vmem [resolvable:$true] %s370_s5 }
  0x70   : > { %v311_v0 = vld [vmem:[%s304_s6] sm:$0x1]  ;;  %v312_v1 = vld [vmem:[%s304_s6 + $0x1] sm:$0x1]  ;;  %s308_s0 = sand.u32 2147483647, %s307_s26 }
  0x71   : > { %s310_s23 = sand.u32 2147483647, %s309_s12  ;;  %v313_v2 = vstv %s308_s0  ;;  %s527_s30 = sshll.u32 %s367_s13, 7 }
  0x72   : > { %v316_v3 = vstv %s310_s23  ;;  %v314_v4 = vmul.f32 %v313_v2, %v311_v0  ;;  %v315_v5 = vmul.f32 %v313_v2, %v312_v1  ;;  %s1041_s26 = scalar_lea.hbm %s1099_s4, %s527_s30  ;;  %s353_s20 = scalar_lea.sflag [#allocation4], %s1011_s1 }
  0x73   : > { %s699_s12 = scalar_lea.vmem %s1036_s5, 256  ;;  %p1124_p4 = scmp.ne.s32.totalorder %s1112_s28, 0 }
  0x74   : > { %v317_v6 = vsub.f32 %v314_v4, %v316_v3  ;;  %v318_v7 = vsub.f32 %v315_v5, %v316_v3  ;;  %p700_p10 = scmp.ne.s32.totalorder %s1036_s5, %s699_s12  ;;  %s812_s8 = smov [#allocation9]  }
  0x75   : > { %s703_s7 = sshll.u32 %s812_s8, 4  ;;  %s704_s7 = int_to_ptr.vmem [resolvable:$false] %s703_s7 }
  0x76   : > { %v319_v8 = vsub.f32 0.0, %v317_v6  ;;  %v320_v9 = vsub.f32 0.0, %v318_v7  ;;  %p701_p6 = pnand %p700_p10, %p1124_p4  ;;  %s705_s25 = scalar_lea.vmem %s704_s7, 512 }
  0x77   : > { %p706_p3 = scmp.lt.s32.totalorder %s1036_s5, %s704_s7  ;;  %p707_p7 = scmp.lt.s32.totalorder %s705_s25, %s699_s12 }
  0x78   : > { %v522_v10 = vmul.f32 -1.442695, %v319_v8  ;;  %v523_v11 = vmul.f32 -1.442695, %v320_v9  ;;  %p702_p9 = pneg %p701_p6 }
  0x79   : > { %p708_p8 = por %p707_p7, %p706_p3 }
  0x7a   : > { %633 = vpow2.f32 %v522_v10 }
  0x7b   : > { %635 = vpow2.f32 %v523_v11  ;;  %p709_p5 = pnand %p708_p8, %p702_p9 }
  0x84   : > { %v634_v12 = vpop.eup %633 }
  0x85   : > { %v636_v13 = vpop.eup %635  ;;  %v327_v14 = vadd.f32 1.0, %v634_v12 }
  0x86   : > { %v328_v16 = vadd.f32 1.0, %v636_v13 }
  0x87   : > { %637 = vrcp.f32 %v327_v14 }
  0x88   : > { %639 = vrcp.f32 %v328_v16 }
  0x91   : > { %v638_v19 = vpop.eup %637 }
  0x92   : > { %v640_v21 = vpop.eup %639  ;;  %v340_v22 = vrot.slane %v638_v19, %v339_v18 }
  0x93   : > { %v344_v24 = vrot.slane %v640_v21, %v339_v18 }
  0x94   : > { %v347_v25 = vmul.f32 %v340_v22, %v333_v20 }
  0x95   : > { %v348_v26 = vmul.f32 %v344_v24, %v334_v23 }
  0x96   : > { %350 = vst.msk [vmem:[%s295_s24] sm:$0xff] %vm349_vm0, %v347_v25 }
  0x97   : > { %351 = vst.msk [vmem:[%s295_s24 + $0x8] sm:$0xff] %vm349_vm0, %v348_v26 }
  0x98   : > { %712 = shalt.err (!%p709_p5)
}
  0x99   : > { %s713_s29 = scalar_lea.hbm %s1041_s26, 256  ;;  %s717_s0 = scalar_lea.hbm %s1099_s4, 4096 }
  0x9a   : > { %p714_p11 = scmp.ne.s32.totalorder %s1041_s26, %s713_s29  ;;  %p718_p2 = scmp.lt.u32.totalorder %s1041_s26, %s1099_s4 }
  0x9b   : > { %p719_p12 = scmp.lt.u32.totalorder %s717_s0, %s713_s29  ;;  %p721_p10 = scmp.lt.u32.totalorder %s713_s29, %s1041_s26 }
  0x9c   : > { %p715_p13 = pnand %p714_p11, %p1124_p4 }
  0x9d   : > { %p720_p1 = por %p719_p12, %p718_p2 }
  0x9e   : > { %p716_p0 = pneg %p715_p13 }
  0x9f   : > { %p722_p6 = por %p721_p10, %p720_p1 }
  0xa1   : > { %p723_p9 = pnand %p722_p6, %p716_p0 }
  0xa3   : > { %726 = shalt.err (!%p723_p9)
}
  0xa4   : > { %s813_s11 = smov 128   ;;  %s814_s13 = smov 8  }
  0xa5   : > { %540 = dma.vmem_to_hbm [thread:$0]  (%p1124_p4), %s1036_s5, 256, %s1041_s26, %s353_s20, %s813_s11, %s813_s11, %s814_s13  }
  0xa6 PF: > { %s1125_s24 = sld [smem:[#allocation15_spill]]  ;;  %p562_p3 = scmp.ge.s32.totalorder %s805_s22, 2 }
  0xa7   : > { %s385_s30 = sand.u32 1, %s777_s15  }
  0xa8   : > { %s386_s18 = scalar_lea.sflag [#allocation4], %s385_s30 }
  0xac   : > { %p1126_p7 = scmp.ne.s32.totalorder %s1125_s24, 0 }
  0xae   : > { %p554_p8 = pnand %p562_p3, %p1126_p7 }
  0xb0   : > { %772 = dma.done.wait (!%p554_p8), %s386_s18, 256  }
  0xb1   : > { %774 = vsyncadd (!%p554_p8), %s386_s18, 4294967040  ;;  %s22_s22 = sadd.s32 1, %s805_s22   ;;  %s1127_s18 = sld [smem:[#allocation14_spill]] }
  0xb2   : > { %p19_p5 = scmp.ge.s32.totalorder %s22_s22, 18   ;;  %s1128_s20 = sld [smem:[#allocation16_spill]] }
  0xb3   : > { %s1129_s15 = smov %s781_s16  ;;  %s1130_s16 = smov %s785_s17 }
  0xb4   : > { %s1131_s17 = smov %s970_s10  ;;  %s1132_s19 = smov %s801_s21 }
  0xb5   : > { %s1133_s21 = smov %s1139_s14  ;;  %21 = sbr.rel (!%p19_p5) target bundleno = 12 (0xc), region = 94 }
  0xbc   :  { %391 = vsyncpa [#allocation3], 1 }
  0xbd   :  { %393 = vsyncpa [#allocation3 + $0x1], 1 }
  0xbe   :  { %394 = vsyncpa [#allocation4], 1 }
  0xbf   :  { %396 = vsyncpa [#allocation4 + $0x1], 1 }
  0xc0   :  { %397 = vsyncpa [#allocation5], 1 }
  0xc1   :  { %399 = vsyncpa [#allocation5 + $0x1], 1 }
  0xc2   :  { %400 = vsyncpa [#allocation6], 1 }
  0xc3   :  { %402 = vsyncpa [#allocation6 + $0x1], 1 }

</bundles_post_ra>
